<compile_context>
chip_gen: v5e
topology: v5e:2x2
jax: 0.10.0
libtpu: 0.0.40
codegen_flags: <defaults>
</compile_context>

<pallas_src>
import functools

import jax
import jax.numpy as jnp
from jax import lax
from jax.experimental import pallas as pl
from jax.experimental.pallas import tpu as pltpu


def _round_up(x, m):
    return ((x + m - 1) // m) * m


def _mixture_kernel(r_ref, i_ref, w_ref, or_ref, oi_ref, acc_r_ref, acc_i_ref,
                    *, bt, compute_dtype):
    # r_ref / i_ref: (Bt, Ts, E), w_ref: (Bt, Ts, 1)
    # or_ref / oi_ref: (Bt, E, E), acc_*_ref: (Bt, E, E) f32 scratch
    s = pl.program_id(1)

    r = r_ref[...]
    im = i_ref[...]
    w = w_ref[...]

    # Weighted copies: one VPU multiply each (w broadcasts along the lane axis).
    wr = (r * w).astype(compute_dtype)
    wi = (im * w).astype(compute_dtype)
    rc = r.astype(compute_dtype)        # no-ops when compute_dtype == input dtype
    ic = im.astype(compute_dtype)

    # Contract the S axis of two (Ts, E) operands -> (E, E); f32 accumulation on the MXU.
    dn = (((0,), (0,)), ((), ()))
    # TODO(synk): confirm via pl.lower_as_mlir that this S-axis contraction lowers to a
    # transposed-LHS MXU matmul (no per-step vxpose); if not, switch to (E, Ts)-layout
    # operands with a minor-dim contraction.

    part_r = []
    part_i = []
    for b in range(bt):                 # static unroll over the batch block
        g_rr = lax.dot_general(wr[b], rc[b], dn, preferred_element_type=jnp.float32)
        g_ii = lax.dot_general(wi[b], ic[b], dn, preferred_element_type=jnp.float32)
        g_ir = lax.dot_general(wi[b], rc[b], dn, preferred_element_type=jnp.float32)
        g_ri = lax.dot_general(wr[b], ic[b], dn, preferred_element_type=jnp.float32)
        part_r.append(g_rr + g_ii)
        part_i.append(g_ir - g_ri)
    part_r = jnp.stack(part_r, axis=0)  # (Bt, E, E) f32
    part_i = jnp.stack(part_i, axis=0)

    @pl.when(s == 0)
    def _first():                       # direct store: no zero-init + read-modify-write
        acc_r_ref[...] = part_r
        acc_i_ref[...] = part_i

    @pl.when(s > 0)
    def _accumulate():
        acc_r_ref[...] += part_r
        acc_i_ref[...] += part_i

    @pl.when(s == pl.num_programs(1) - 1)
    def _finalize():
        or_ref[...] = acc_r_ref[...].astype(or_ref.dtype)
        oi_ref[...] = acc_i_ref[...].astype(oi_ref.dtype)
        # TODO(synk): for E < 128 a fused lane-dense (Bt, 2*E*E) output would avoid
        # masked stores here, but the (E, E) -> (E*E,) in-kernel relayout is not a
        # universally supported reshape; writeback only happens once per S reduction.


def complex_mixture(real, imag, weight, *, ts=None, bt=None, use_bf16_matmul=False):
    """real, imag: (B, S, E); weight: (B, S, 1) or (B, S). Returns [out_r, out_i], each (B, E, E) f32."""
    B, S, E = real.shape
    assert imag.shape == (B, S, E)
    if weight.ndim == 2:
        weight = weight[..., None]
    assert weight.shape == (B, S, 1)

    itemsize = jnp.dtype(real.dtype).itemsize
    e_lanes = _round_up(E, 128)             # lane-padded width of an (..., E) VMEM tile

    # ---- tile-size heuristic: adapt Ts / Bt to E so steps are not overhead-bound ----
    if bt is None:
        bt = min(B, 8) if E <= 64 else 1    # batch blocking only pays off for small E
    bt = max(1, min(bt, B))

    if ts is None:
        # r + i + w double-buffered input blocks, counted at their lane-padded VMEM size.
        input_budget = 24 << 20
        row_bytes = (2 * e_lanes + 128) * itemsize
        max_rows = max(512, input_budget // (2 * row_bytes))
        ts = max(8, max_rows // bt)
    if ts >= S:
        ts = S
    else:
        ts = max(8, (ts // 8) * 8)          # second-minor block dim must be a multiple of 8

    # ---- pad S (zero rows have zero weight -> contribute nothing) and B ----
    s_pad = _round_up(S, ts)
    b_pad = _round_up(B, bt)
    if s_pad != S or b_pad != B:
        pad = ((0, b_pad - B), (0, s_pad - S), (0, 0))
        real = jnp.pad(real, pad)
        imag = jnp.pad(imag, pad)
        weight = jnp.pad(weight, pad)
    num_s = s_pad // ts
    num_b = b_pad // bt

    compute_dtype = real.dtype
    if use_bf16_matmul and real.dtype == jnp.float32:
        compute_dtype = jnp.bfloat16        # MXU-native operands; f32 accumulation is kept

    kernel = functools.partial(_mixture_kernel, bt=bt, compute_dtype=compute_dtype)

    # ---- explicit VMEM budget (v5e's scoped default is only 16 MiB; v7x has 64 MiB total) ----
    e_sub = _round_up(E, 8)
    vmem_need = (
        2 * bt * ts * (2 * e_lanes + 128) * itemsize       # double-buffered r, i, w blocks
        + (2 * 2 + 2) * bt * e_sub * e_lanes * 4           # double-buffered outputs + scratch
    )
    try:
        vmem_cap = pltpu.get_tpu_info().vmem_capacity_bytes
    except Exception:
        vmem_cap = 64 << 20                                # conservative (v7x per-core) fallback
    vmem_limit = int(min(max(vmem_need + (8 << 20), 32 << 20), int(vmem_cap * 0.9)))

    grid_spec = pltpu.PrefetchScalarGridSpec(
        num_scalar_prefetch=0,
        grid=(num_b, num_s),
        in_specs=[
            pl.BlockSpec((bt, ts, E), lambda b, s: (b, s, 0)),
            pl.BlockSpec((bt, ts, E), lambda b, s: (b, s, 0)),
            pl.BlockSpec((bt, ts, 1), lambda b, s: (b, s, 0)),
        ],
        out_specs=[
            pl.BlockSpec((bt, E, E), lambda b, s: (b, 0, 0)),
            pl.BlockSpec((bt, E, E), lambda b, s: (b, 0, 0)),
        ],
        scratch_shapes=[
            pltpu.VMEM((bt, E, E), jnp.float32),
            pltpu.VMEM((bt, E, E), jnp.float32),
        ],
    )

    out_r, out_i = pl.pallas_call(
        kernel,
        out_shape=(
            jax.ShapeDtypeStruct((b_pad, E, E), jnp.float32),
            jax.ShapeDtypeStruct((b_pad, E, E), jnp.float32),
        ),
        grid_spec=grid_spec,
        compiler_params=pltpu.CompilerParams(
            # batch-blocks -> megacore-parallel; S is the reduction axis (accumulator).
            dimension_semantics=("parallel", "arbitrary"),
            vmem_limit_bytes=vmem_limit,
        ),
    )(real, imag, weight)

    if b_pad != B:
        out_r = out_r[:B]
        out_i = out_i[:B]
    # TODO(synk): for very large E add a grid axis tiling the output columns (keeps the
    # (Bt, E, E) accumulators inside v7x's 64 MiB VMEM); when B < #TensorCores, split the
    # S reduction across cores instead of relying on the batch axis for megacore.
    return [out_r, out_i]


def _reference(real, imag, weight):
    # Pure-JAX reference mirroring the torch loop.
    w = weight[..., 0]                                     # (B, S)
    hp = jax.lax.Precision.HIGHEST
    rr = jnp.einsum("bs,bsp,bsq->bpq", w, real, real, precision=hp)
    ii = jnp.einsum("bs,bsp,bsq->bpq", w, imag, imag, precision=hp)
    ir = jnp.einsum("bs,bsp,bsq->bpq", w, imag, real, precision=hp)
    ri = jnp.einsum("bs,bsp,bsq->bpq", w, real, imag, precision=hp)
    return [rr + ii, ir - ri]


if __name__ == "__main__":
    key = jax.random.PRNGKey(0)
    k1, k2, k3, k4, k5, k6 = jax.random.split(key, 6)

    # Small demo shapes consistent with the module: batch=2, seq=8, embedding=32.
    B, S, E = 2, 8, 32
    real = jax.random.normal(k1, (B, S, E), dtype=jnp.float32)
    imag = jax.random.normal(k2, (B, S, E), dtype=jnp.float32)
    weight = jax.nn.softmax(jax.random.normal(k3, (B, S)), axis=-1)[..., None]

    out_r, out_i = complex_mixture(real, imag, weight)
    jax.block_until_ready(out_r)
    jax.block_until_ready(out_i)
    ref_r, ref_i = _reference(real, imag, weight)
    assert out_r.shape == (B, E, E) and out_r.dtype == jnp.float32
    assert out_i.shape == (B, E, E) and out_i.dtype == jnp.float32
    assert jnp.allclose(out_r, ref_r, atol=1e-3, rtol=1e-3)
    assert jnp.allclose(out_i, ref_i, atol=1e-3, rtol=1e-3)

    # Opt-in bf16 MXU fast path for f32 inputs (looser tolerance vs the f32 reference).
    out_r16, out_i16 = complex_mixture(real, imag, weight, use_bf16_matmul=True)
    jax.block_until_ready(out_r16)
    assert jnp.allclose(out_r16, ref_r, atol=5e-2, rtol=5e-2)
    assert jnp.allclose(out_i16, ref_i, atol=5e-2, rtol=5e-2)

    # Exercise S-axis accumulation, batch blocking and batch/S padding with explicit tiles.
    B2, S2 = 3, 40
    real2 = jax.random.normal(k4, (B2, S2, E), dtype=jnp.float32)
    imag2 = jax.random.normal(k5, (B2, S2, E), dtype=jnp.float32)
    weight2 = jax.nn.softmax(jax.random.normal(k6, (B2, S2)), axis=-1)[..., None]
    out_r2, out_i2 = complex_mixture(real2, imag2, weight2, ts=16, bt=2)
    jax.block_until_ready(out_r2)
    ref_r2, ref_i2 = _reference(real2, imag2, weight2)
    assert jnp.allclose(out_r2, ref_r2, atol=1e-3, rtol=1e-3)
    assert jnp.allclose(out_i2, ref_i2, atol=1e-3, rtol=1e-3)

    print("KERNEL_OK")
</pallas_src>

<mosaic_0001>
module attributes {stable_mosaic.version = 11 : i64} {
  func.func @_mixture_kernel(%arg0: i32, %arg1: i32, %arg2: memref<2x8x32xf32, #tpu.memory_space<vmem>>, %arg3: memref<2x8x32xf32, #tpu.memory_space<vmem>>, %arg4: memref<2x8x1xf32, #tpu.memory_space<vmem>>, %arg5: memref<2x32x32xf32, #tpu.memory_space<vmem>>, %arg6: memref<2x32x32xf32, #tpu.memory_space<vmem>>, %arg7: memref<2x32x32xf32, #tpu.memory_space<vmem>>, %arg8: memref<2x32x32xf32, #tpu.memory_space<vmem>>) attributes {dimension_semantics = [#tpu.dimension_semantics<parallel>, #tpu.dimension_semantics<arbitrary>], iteration_bounds = array<i64: 1, 1>, scalar_prefetch = 0 : i64, scratch_operands = 2 : i64, tpu.core_type = #tpu.core_type<tc>, window_params = [{transform_indices = @transform_0, window_bounds = array<i64: 2, 8, 32>}, {transform_indices = @transform_1, window_bounds = array<i64: 2, 8, 32>}, {transform_indices = @transform_2, window_bounds = array<i64: 2, 8, 1>}, {transform_indices = @transform_3, window_bounds = array<i64: 2, 32, 32>}, {transform_indices = @transform_4, window_bounds = array<i64: 2, 32, 32>}]} {
    %c0 = arith.constant 0 : index
    %c0_0 = arith.constant 0 : index
    %c0_1 = arith.constant 0 : index
    %0 = vector.load %arg2[%c0, %c0_0, %c0_1] : memref<2x8x32xf32, #tpu.memory_space<vmem>>, vector<2x8x32xf32>
    %c0_2 = arith.constant 0 : index
    %c0_3 = arith.constant 0 : index
    %c0_4 = arith.constant 0 : index
    %1 = vector.load %arg3[%c0_2, %c0_3, %c0_4] : memref<2x8x32xf32, #tpu.memory_space<vmem>>, vector<2x8x32xf32>
    %c0_5 = arith.constant 0 : index
    %c0_6 = arith.constant 0 : index
    %c0_7 = arith.constant 0 : index
    %2 = vector.load %arg4[%c0_5, %c0_6, %c0_7] : memref<2x8x1xf32, #tpu.memory_space<vmem>>, vector<2x8x1xf32>
    %3 = vector.broadcast %2 : vector<2x8x1xf32> to vector<2x8x32xf32>
    %4 = arith.mulf %0, %3 : vector<2x8x32xf32>
    %5 = vector.broadcast %2 : vector<2x8x1xf32> to vector<2x8x32xf32>
    %6 = arith.mulf %1, %5 : vector<2x8x32xf32>
    %7 = vector.extract_strided_slice %4 {offsets = [0, 0, 0], sizes = [1, 8, 32], strides = [1, 1, 1]} : vector<2x8x32xf32> to vector<1x8x32xf32>
    %8 = vector.shape_cast %7 : vector<1x8x32xf32> to vector<8x32xf32>
    %9 = vector.extract_strided_slice %0 {offsets = [0, 0, 0], sizes = [1, 8, 32], strides = [1, 1, 1]} : vector<2x8x32xf32> to vector<1x8x32xf32>
    %10 = vector.shape_cast %9 : vector<1x8x32xf32> to vector<8x32xf32>
    %cst = arith.constant dense<0.000000e+00> : vector<32x32xf32>
    %11 = tpu.matmul %8, %10, %cst {dimension_numbers = #tpu.dot_dimension_numbers<[0], [0], [1], [1], [0, 1, 1, 1], [], []>} : vector<8x32xf32>, vector<8x32xf32>, vector<32x32xf32> -> vector<32x32xf32>
    %12 = vector.extract_strided_slice %6 {offsets = [0, 0, 0], sizes = [1, 8, 32], strides = [1, 1, 1]} : vector<2x8x32xf32> to vector<1x8x32xf32>
    %13 = vector.shape_cast %12 : vector<1x8x32xf32> to vector<8x32xf32>
    %14 = vector.extract_strided_slice %1 {offsets = [0, 0, 0], sizes = [1, 8, 32], strides = [1, 1, 1]} : vector<2x8x32xf32> to vector<1x8x32xf32>
    %15 = vector.shape_cast %14 : vector<1x8x32xf32> to vector<8x32xf32>
    %cst_8 = arith.constant dense<0.000000e+00> : vector<32x32xf32>
    %16 = tpu.matmul %13, %15, %cst_8 {dimension_numbers = #tpu.dot_dimension_numbers<[0], [0], [1], [1], [0, 1, 1, 1], [], []>} : vector<8x32xf32>, vector<8x32xf32>, vector<32x32xf32> -> vector<32x32xf32>
    %17 = vector.extract_strided_slice %6 {offsets = [0, 0, 0], sizes = [1, 8, 32], strides = [1, 1, 1]} : vector<2x8x32xf32> to vector<1x8x32xf32>
    %18 = vector.shape_cast %17 : vector<1x8x32xf32> to vector<8x32xf32>
    %19 = vector.extract_strided_slice %0 {offsets = [0, 0, 0], sizes = [1, 8, 32], strides = [1, 1, 1]} : vector<2x8x32xf32> to vector<1x8x32xf32>
    %20 = vector.shape_cast %19 : vector<1x8x32xf32> to vector<8x32xf32>
    %cst_9 = arith.constant dense<0.000000e+00> : vector<32x32xf32>
    %21 = tpu.matmul %18, %20, %cst_9 {dimension_numbers = #tpu.dot_dimension_numbers<[0], [0], [1], [1], [0, 1, 1, 1], [], []>} : vector<8x32xf32>, vector<8x32xf32>, vector<32x32xf32> -> vector<32x32xf32>
    %22 = vector.extract_strided_slice %4 {offsets = [0, 0, 0], sizes = [1, 8, 32], strides = [1, 1, 1]} : vector<2x8x32xf32> to vector<1x8x32xf32>
    %23 = vector.shape_cast %22 : vector<1x8x32xf32> to vector<8x32xf32>
    %24 = vector.extract_strided_slice %1 {offsets = [0, 0, 0], sizes = [1, 8, 32], strides = [1, 1, 1]} : vector<2x8x32xf32> to vector<1x8x32xf32>
    %25 = vector.shape_cast %24 : vector<1x8x32xf32> to vector<8x32xf32>
    %cst_10 = arith.constant dense<0.000000e+00> : vector<32x32xf32>
    %26 = tpu.matmul %23, %25, %cst_10 {dimension_numbers = #tpu.dot_dimension_numbers<[0], [0], [1], [1], [0, 1, 1, 1], [], []>} : vector<8x32xf32>, vector<8x32xf32>, vector<32x32xf32> -> vector<32x32xf32>
    %27 = arith.addf %11, %16 : vector<32x32xf32>
    %28 = arith.subf %21, %26 : vector<32x32xf32>
    %29 = vector.extract_strided_slice %4 {offsets = [1, 0, 0], sizes = [1, 8, 32], strides = [1, 1, 1]} : vector<2x8x32xf32> to vector<1x8x32xf32>
    %30 = vector.shape_cast %29 : vector<1x8x32xf32> to vector<8x32xf32>
    %31 = vector.extract_strided_slice %0 {offsets = [1, 0, 0], sizes = [1, 8, 32], strides = [1, 1, 1]} : vector<2x8x32xf32> to vector<1x8x32xf32>
    %32 = vector.shape_cast %31 : vector<1x8x32xf32> to vector<8x32xf32>
    %cst_11 = arith.constant dense<0.000000e+00> : vector<32x32xf32>
    %33 = tpu.matmul %30, %32, %cst_11 {dimension_numbers = #tpu.dot_dimension_numbers<[0], [0], [1], [1], [0, 1, 1, 1], [], []>} : vector<8x32xf32>, vector<8x32xf32>, vector<32x32xf32> -> vector<32x32xf32>
    %34 = vector.extract_strided_slice %6 {offsets = [1, 0, 0], sizes = [1, 8, 32], strides = [1, 1, 1]} : vector<2x8x32xf32> to vector<1x8x32xf32>
    %35 = vector.shape_cast %34 : vector<1x8x32xf32> to vector<8x32xf32>
    %36 = vector.extract_strided_slice %1 {offsets = [1, 0, 0], sizes = [1, 8, 32], strides = [1, 1, 1]} : vector<2x8x32xf32> to vector<1x8x32xf32>
    %37 = vector.shape_cast %36 : vector<1x8x32xf32> to vector<8x32xf32>
    %cst_12 = arith.constant dense<0.000000e+00> : vector<32x32xf32>
    %38 = tpu.matmul %35, %37, %cst_12 {dimension_numbers = #tpu.dot_dimension_numbers<[0], [0], [1], [1], [0, 1, 1, 1], [], []>} : vector<8x32xf32>, vector<8x32xf32>, vector<32x32xf32> -> vector<32x32xf32>
    %39 = vector.extract_strided_slice %6 {offsets = [1, 0, 0], sizes = [1, 8, 32], strides = [1, 1, 1]} : vector<2x8x32xf32> to vector<1x8x32xf32>
    %40 = vector.shape_cast %39 : vector<1x8x32xf32> to vector<8x32xf32>
    %41 = vector.extract_strided_slice %0 {offsets = [1, 0, 0], sizes = [1, 8, 32], strides = [1, 1, 1]} : vector<2x8x32xf32> to vector<1x8x32xf32>
    %42 = vector.shape_cast %41 : vector<1x8x32xf32> to vector<8x32xf32>
    %cst_13 = arith.constant dense<0.000000e+00> : vector<32x32xf32>
    %43 = tpu.matmul %40, %42, %cst_13 {dimension_numbers = #tpu.dot_dimension_numbers<[0], [0], [1], [1], [0, 1, 1, 1], [], []>} : vector<8x32xf32>, vector<8x32xf32>, vector<32x32xf32> -> vector<32x32xf32>
    %44 = vector.extract_strided_slice %4 {offsets = [1, 0, 0], sizes = [1, 8, 32], strides = [1, 1, 1]} : vector<2x8x32xf32> to vector<1x8x32xf32>
    %45 = vector.shape_cast %44 : vector<1x8x32xf32> to vector<8x32xf32>
    %46 = vector.extract_strided_slice %1 {offsets = [1, 0, 0], sizes = [1, 8, 32], strides = [1, 1, 1]} : vector<2x8x32xf32> to vector<1x8x32xf32>
    %47 = vector.shape_cast %46 : vector<1x8x32xf32> to vector<8x32xf32>
    %cst_14 = arith.constant dense<0.000000e+00> : vector<32x32xf32>
    %48 = tpu.matmul %45, %47, %cst_14 {dimension_numbers = #tpu.dot_dimension_numbers<[0], [0], [1], [1], [0, 1, 1, 1], [], []>} : vector<8x32xf32>, vector<8x32xf32>, vector<32x32xf32> -> vector<32x32xf32>
    %49 = arith.addf %33, %38 : vector<32x32xf32>
    %50 = arith.subf %43, %48 : vector<32x32xf32>
    %51 = vector.shape_cast %27 : vector<32x32xf32> to vector<1x32x32xf32>
    %52 = vector.shape_cast %49 : vector<32x32xf32> to vector<1x32x32xf32>
    %53 = tpu.concatenate %51, %52 in 0 : vector<1x32x32xf32>, vector<1x32x32xf32> -> vector<2x32x32xf32>
    %54 = vector.shape_cast %28 : vector<32x32xf32> to vector<1x32x32xf32>
    %55 = vector.shape_cast %50 : vector<32x32xf32> to vector<1x32x32xf32>
    %56 = tpu.concatenate %54, %55 in 0 : vector<1x32x32xf32>, vector<1x32x32xf32> -> vector<2x32x32xf32>
    %c0_i32 = arith.constant 0 : i32
    %57 = arith.cmpi eq, %arg1, %c0_i32 : i32
    %58 = arith.extui %57 : i1 to i32
    %c0_i32_15 = arith.constant 0 : i32
    %59 = arith.cmpi ne, %58, %c0_i32_15 : i32
    scf.if %59 {
      %c0_20 = arith.constant 0 : index
      %c0_21 = arith.constant 0 : index
      %c0_22 = arith.constant 0 : index
      %66 = vector.load %arg7[%c0_20, %c0_21, %c0_22] : memref<2x32x32xf32, #tpu.memory_space<vmem>>, vector<2x32x32xf32>
      tpu.vector_store %arg7[%c0_20, %c0_21, %c0_22], %53 {strides = array<i32>} : memref<2x32x32xf32, #tpu.memory_space<vmem>>, vector<2x32x32xf32>,
      %c0_23 = arith.constant 0 : index
      %c0_24 = arith.constant 0 : index
      %c0_25 = arith.constant 0 : index
      %67 = vector.load %arg8[%c0_23, %c0_24, %c0_25] : memref<2x32x32xf32, #tpu.memory_space<vmem>>, vector<2x32x32xf32>
      tpu.vector_store %arg8[%c0_23, %c0_24, %c0_25], %56 {strides = array<i32>} : memref<2x32x32xf32, #tpu.memory_space<vmem>>, vector<2x32x32xf32>,
    } else {
    }
    %c0_i32_16 = arith.constant 0 : i32
    %60 = arith.cmpi sgt, %arg1, %c0_i32_16 : i32
    %61 = arith.extui %60 : i1 to i32
    %c0_i32_17 = arith.constant 0 : i32
    %62 = arith.cmpi ne, %61, %c0_i32_17 : i32
    scf.if %62 {
      %c0_20 = arith.constant 0 : index
      %c0_21 = arith.constant 0 : index
      %c0_22 = arith.constant 0 : index
      %66 = vector.load %arg7[%c0_20, %c0_21, %c0_22] : memref<2x32x32xf32, #tpu.memory_space<vmem>>, vector<2x32x32xf32>
      %67 = arith.addf %66, %53 : vector<2x32x32xf32>
      %c0_23 = arith.constant 0 : index
      %c0_24 = arith.constant 0 : index
      %c0_25 = arith.constant 0 : index
      %68 = vector.load %arg7[%c0_23, %c0_24, %c0_25] : memref<2x32x32xf32, #tpu.memory_space<vmem>>, vector<2x32x32xf32>
      tpu.vector_store %arg7[%c0_23, %c0_24, %c0_25], %67 {strides = array<i32>} : memref<2x32x32xf32, #tpu.memory_space<vmem>>, vector<2x32x32xf32>,
      %c0_26 = arith.constant 0 : index
      %c0_27 = arith.constant 0 : index
      %c0_28 = arith.constant 0 : index
      %69 = vector.load %arg8[%c0_26, %c0_27, %c0_28] : memref<2x32x32xf32, #tpu.memory_space<vmem>>, vector<2x32x32xf32>
      %70 = arith.addf %69, %56 : vector<2x32x32xf32>
      %c0_29 = arith.constant 0 : index
      %c0_30 = arith.constant 0 : index
      %c0_31 = arith.constant 0 : index
      %71 = vector.load %arg8[%c0_29, %c0_30, %c0_31] : memref<2x32x32xf32, #tpu.memory_space<vmem>>, vector<2x32x32xf32>
      tpu.vector_store %arg8[%c0_29, %c0_30, %c0_31], %70 {strides = array<i32>} : memref<2x32x32xf32, #tpu.memory_space<vmem>>, vector<2x32x32xf32>,
    } else {
    }
    %c0_i32_18 = arith.constant 0 : i32
    %63 = arith.cmpi eq, %arg1, %c0_i32_18 : i32
    %64 = arith.extui %63 : i1 to i32
    %c0_i32_19 = arith.constant 0 : i32
    %65 = arith.cmpi ne, %64, %c0_i32_19 : i32
    scf.if %65 {
      %c0_20 = arith.constant 0 : index
      %c0_21 = arith.constant 0 : index
      %c0_22 = arith.constant 0 : index
      %66 = vector.load %arg7[%c0_20, %c0_21, %c0_22] : memref<2x32x32xf32, #tpu.memory_space<vmem>>, vector<2x32x32xf32>
      %c0_23 = arith.constant 0 : index
      %c0_24 = arith.constant 0 : index
      %c0_25 = arith.constant 0 : index
      %67 = vector.load %arg5[%c0_23, %c0_24, %c0_25] : memref<2x32x32xf32, #tpu.memory_space<vmem>>, vector<2x32x32xf32>
      tpu.vector_store %arg5[%c0_23, %c0_24, %c0_25], %66 {strides = array<i32>} : memref<2x32x32xf32, #tpu.memory_space<vmem>>, vector<2x32x32xf32>,
      %c0_26 = arith.constant 0 : index
      %c0_27 = arith.constant 0 : index
      %c0_28 = arith.constant 0 : index
      %68 = vector.load %arg8[%c0_26, %c0_27, %c0_28] : memref<2x32x32xf32, #tpu.memory_space<vmem>>, vector<2x32x32xf32>
      %c0_29 = arith.constant 0 : index
      %c0_30 = arith.constant 0 : index
      %c0_31 = arith.constant 0 : index
      %69 = vector.load %arg6[%c0_29, %c0_30, %c0_31] : memref<2x32x32xf32, #tpu.memory_space<vmem>>, vector<2x32x32xf32>
      tpu.vector_store %arg6[%c0_29, %c0_30, %c0_31], %68 {strides = array<i32>} : memref<2x32x32xf32, #tpu.memory_space<vmem>>, vector<2x32x32xf32>,
    } else {
    }
    return
  }
  func.func @transform_0(%arg0: i32, %arg1: i32) -> (i32, i32, i32) {
    %c0_i32 = arith.constant 0 : i32
    %c0_i32_0 = arith.constant 0 : i32
    return %arg0, %arg1, %c0_i32 : i32, i32, i32
  }
  func.func @transform_1(%arg0: i32, %arg1: i32) -> (i32, i32, i32) {
    %c0_i32 = arith.constant 0 : i32
    %c0_i32_0 = arith.constant 0 : i32
    return %arg0, %arg1, %c0_i32 : i32, i32, i32
  }
  func.func @transform_2(%arg0: i32, %arg1: i32) -> (i32, i32, i32) {
    %c0_i32 = arith.constant 0 : i32
    %c0_i32_0 = arith.constant 0 : i32
    return %arg0, %arg1, %c0_i32 : i32, i32, i32
  }
  func.func @transform_3(%arg0: i32, %arg1: i32) -> (i32, i32, i32) {
    %c0_i32 = arith.constant 0 : i32
    %c0_i32_0 = arith.constant 0 : i32
    %c0_i32_1 = arith.constant 0 : i32
    return %arg0, %c0_i32, %c0_i32_0 : i32, i32, i32
  }
  func.func @transform_4(%arg0: i32, %arg1: i32) -> (i32, i32, i32) {
    %c0_i32 = arith.constant 0 : i32
    %c0_i32_0 = arith.constant 0 : i32
    %c0_i32_1 = arith.constant 0 : i32
    return %arg0, %c0_i32, %c0_i32_0 : i32, i32, i32
  }
}

</mosaic_0001>

<bundles_post_ra>
// kernel: tpu_custom_call.1
= control target key start
LH: loop header
LB: loop body
LE: loop exit
PB: predicated region body
PF: predicated region fallthrough
CT: control target
= control target key end

     0   :  { %10 = vsyncpa [#allocation5], 0  ;;  %s861_s0 = inlined_call_operand.vmem [shape: f32[2,8,32], index: 0, kind: input, shape index: {}]   ;;  %s862_s1 = inlined_call_operand.hbm [shape: f32[2,8,32], index: 1, kind: input, shape index: {}]   ;;  %s863_s2 = inlined_call_operand.vmem [shape: f32[2,8,1], index: 2, kind: input, shape index: {}]   ;;  %s864_s3 = inlined_call_operand.hbm [shape: f32[2,32,32], index: 3, kind: output, shape index: {0}]   ;;  %s865_s4 = inlined_call_operand.hbm [shape: f32[2,32,32], index: 4, kind: output, shape index: {1}]  }
   0x1   :  { %11 = vsyncpa [#allocation6], 0 }
   0x2   :  { %12 = vsyncpa [#allocation9], 0  ;;  %s19_s17 = sshll.u32 %s862_s1, 4  ;;  %s736_s18 = smov [#allocation4]   ;;  %s20_s17 = int_to_ptr.hbm [resolvable:$true] %s19_s17 }
   0x3   :  { %s21_s19 = sshll.u32 %s736_s18, 4  ;;  %s737_s20 = smov 128   ;;  %s22_s19 = int_to_ptr.vmem [resolvable:$true] %s21_s19 }
   0x4   :  { %s738_s21 = smov 8  }
   0x5   :  { %27 = dma.hbm_to_vmem [thread:$0]  %s20_s17, 256, %s22_s19, [#allocation5], %s737_s20, %s737_s20, %s738_s21  }
   0x6   :  { %730 = dma.done.wait [#allocation5], 256  }
   0x7   :  { %731 = vsyncadd [#allocation5], 4294967040  ;;  %v739_v0 = vmov 0   ;;  %v38_v1 = vld [vmem:[%s863_s2] sm:$0xff]  ;;  %v39_v2 = vld [vmem:[%s863_s2 + $0x8] sm:$0xff]  ;;  %vm86_vm0 = vcmask 64512  }
   0x8   :  { %657 = vset.pattern.permute.xlu0 %v739_v0  ;;  %v34_v3 = vld [vmem:[%s861_s0] sm:$0xff]  ;;  %v37_v5 = vld [vmem:[#allocation4 + $0x8] sm:$0xff]  ;;  %vm475_vm1 = vcmask 261120   ;;  %s587_s5 = sshll.u32 %s864_s3, 4  ;;  %s741_s6 = smov [#allocation8]   ;;  %s588_s5 = int_to_ptr.hbm [resolvable:$true] %s587_s5 }
   0x9   :  { %42 = vperm.xlu0 %657, %v38_v1   ;;  %v36_v4 = vld [vmem:[#allocation4] sm:$0xff]  ;;  %245 = vmatpush.msra.mxu3 %v34_v3  ;;  %v35_v6 = vld [vmem:[%s861_s0 + $0x8] sm:$0xff]  ;;  %s740_s0 = smov [#allocation7]   ;;  %s598_s7 = sshll.u32 %s741_s6, 4  ;;  %s599_s7 = int_to_ptr.vmem [resolvable:$true] %s598_s7 }
   0xa   :  { %216 = vmatpush.msra.mxu2 %v36_v4  ;;  %114 = vmatpush.msra.mxu0 %v36_v4  ;;  %s585_s2 = sshll.u32 %s740_s0, 4  ;;  %s600_s10 = sshll.u32 %s865_s4, 4  ;;  %s586_s2 = int_to_ptr.vmem [resolvable:$true] %s585_s2  ;;  %s601_s10 = int_to_ptr.hbm [resolvable:$true] %s600_s10 }
   0xb   :  { %143 = vmatpush.msra.mxu1 %v34_v3  ;;  %453 = vmatpush.msrb.mxu3 %v35_v6 }
   0xc   :  { %424 = vmatpush.msrb.mxu2 %v37_v5  ;;  %322 = vmatpush.msrb.mxu0 %v37_v5 }
   0xd   :  { %351 = vmatpush.msrb.mxu1 %v35_v6 }
  0x11   :  { %47 = vperm.xlu0 %657, %v39_v2  }
  0x7b   :  { %v43_v7 = vpop.permute.xlu0 %42 }
  0x7c   :  { %v50_v8 = vmul.f32 %v43_v7, %v34_v3  ;;  %v52_v11 = vmul.f32 %v43_v7, %v36_v4 }
  0x7e   :  { %157 = vxpose.xlu1.b32.start.end [1/1] (short) (narrow) %v50_v8, 32 }
  0x83   :  { %v48_v9 = vpop.permute.xlu0 %47 }
  0x84   :  { %v51_v10 = vmul.f32 %v48_v9, %v35_v6  ;;  %v53_v12 = vmul.f32 %v48_v9, %v37_v5 }
  0x86   :  { %365 = vxpose.xlu2.b32.start.end [1/1] (short) (narrow) %v51_v10, 32 }
  0x9e   :  { %54 = vxpose.xlu1.b32.start.end [1/1] (short) (narrow) %v52_v11, 32 }
  0xa6   :  { %263 = vxpose.xlu2.b32.start.end [1/1] (short) (narrow) %v53_v12, 32 }
 0x11f   :  { %v381_v16 = vpop.trf.xlu2 }
 0x122   :  { %v173_v13 = vpop.trf.xlu1 }
 0x123   :  { %626 = vmatmul.msk.f32.vlgmr.msra.gmra.mxu2 %vm86_vm0, %v173_v13  ;;  %630 = vmatmul.msk.f32.vlgmr.msra.gmra.mxu3 %vm86_vm0, %v173_v13 }
 0x127   :  { %v382_v18 = vpop.trf.xlu2 }
 0x12a   :  { %v174_v14 = vpop.trf.xlu1 }
 0x12b   :  { %627 = vmatmul.msk.f32.gmra.mxu2 %vm86_vm0, %v174_v14  ;;  %631 = vmatmul.msk.f32.gmra.mxu3 %vm86_vm0, %v174_v14 }
 0x12f   :  { %v383_v20 = vpop.trf.xlu2 }
 0x132   :  { %v175_v15 = vpop.trf.xlu1 }
 0x133   :  { %628 = vmatmul.msk.f32.gmra.mxu2 %vm86_vm0, %v175_v15  ;;  %632 = vmatmul.msk.f32.gmra.mxu3 %vm86_vm0, %v175_v15 }
 0x137   :  { %v384_v22 = vpop.trf.xlu2 }
 0x13a   :  { %v176_v17 = vpop.trf.xlu1 }
 0x13b   :  { %629 = vmatmul.msk.f32.gmra.mxu2 %vm86_vm0, %v176_v17  ;;  %633 = vmatmul.msk.f32.gmra.mxu3 %vm86_vm0, %v176_v17 }
 0x13f   :  { %v279_v25 = vpop.trf.xlu2 }
 0x142   :  { %v70_v19 = vpop.trf.xlu1 }
 0x143   :  { %618 = vmatmul.msk.f32.vlgmr.msra.gmra.mxu0 %vm86_vm0, %v70_v19  ;;  %622 = vmatmul.msk.f32.vlgmr.msra.gmra.mxu1 %vm86_vm0, %v70_v19 }
 0x144   :  { %642 = vmatmul.msk.f32.vlgmr.msrb.gmra.mxu2 %vm86_vm0, %v381_v16  ;;  %646 = vmatmul.msk.f32.vlgmr.msrb.gmra.mxu3 %vm86_vm0, %v381_v16 }
 0x147   :  { %v280_v26 = vpop.trf.xlu2 }
 0x14a   :  { %v71_v21 = vpop.trf.xlu1 }
 0x14b   :  { %619 = vmatmul.msk.f32.gmra.mxu0 %vm86_vm0, %v71_v21  ;;  %623 = vmatmul.msk.f32.gmra.mxu1 %vm86_vm0, %v71_v21 }
 0x14c   :  { %643 = vmatmul.msk.f32.gmra.mxu2 %vm86_vm0, %v382_v18  ;;  %647 = vmatmul.msk.f32.gmra.mxu3 %vm86_vm0, %v382_v18 }
 0x14f   :  { %v281_v27 = vpop.trf.xlu2 }
 0x152   :  { %v72_v23 = vpop.trf.xlu1 }
 0x153   :  { %620 = vmatmul.msk.f32.gmra.mxu0 %vm86_vm0, %v72_v23  ;;  %624 = vmatmul.msk.f32.gmra.mxu1 %vm86_vm0, %v72_v23 }
 0x154   :  { %644 = vmatmul.msk.f32.gmra.mxu2 %vm86_vm0, %v383_v20  ;;  %648 = vmatmul.msk.f32.gmra.mxu3 %vm86_vm0, %v383_v20 }
 0x157   :  { %v282_v28 = vpop.trf.xlu2 }
 0x15a   :  { %v73_v24 = vpop.trf.xlu1 }
 0x15b   :  { %621 = vmatmul.msk.f32.gmra.mxu0 %vm86_vm0, %v73_v24  ;;  %625 = vmatmul.msk.f32.gmra.mxu1 %vm86_vm0, %v73_v24 }
 0x15c   :  { %645 = vmatmul.msk.f32.gmra.mxu2 %vm86_vm0, %v384_v22  ;;  %649 = vmatmul.msk.f32.gmra.mxu3 %vm86_vm0, %v384_v22 }
 0x163   :  { %634 = vmatmul.msk.f32.vlgmr.msrb.gmra.mxu0 %vm86_vm0, %v279_v25  ;;  %638 = vmatmul.msk.f32.vlgmr.msrb.gmra.mxu1 %vm86_vm0, %v279_v25 }
 0x16b   :  { %635 = vmatmul.msk.f32.gmra.mxu0 %vm86_vm0, %v280_v26  ;;  %639 = vmatmul.msk.f32.gmra.mxu1 %vm86_vm0, %v280_v26 }
 0x173   :  { %636 = vmatmul.msk.f32.gmra.mxu0 %vm86_vm0, %v281_v27  ;;  %640 = vmatmul.msk.f32.gmra.mxu1 %vm86_vm0, %v281_v27 }
 0x17b   :  { %637 = vmatmul.msk.f32.gmra.mxu0 %vm86_vm0, %v282_v28  ;;  %641 = vmatmul.msk.f32.gmra.mxu1 %vm86_vm0, %v282_v28 }
 0x1a6   :  { %v218_v29 = vpop.f32.mrf.mxu2  ;;  %v247_v30 = vpop.f32.mrf.mxu3 }
 0x1ae   :  { %v221_v31 = vpop.f32.mrf.mxu2  ;;  %v250_v32 = vpop.f32.mrf.mxu3 }
 0x1b6   :  { %v224_v37 = vpop.f32.mrf.mxu2  ;;  %v253_v38 = vpop.f32.mrf.mxu3 }
 0x1be   :  { %v227_v45 = vpop.f32.mrf.mxu2  ;;  %v256_v46 = vpop.f32.mrf.mxu3 }
 0x1c0   :  { %v116_v33 = vpop.f32.mrf.mxu0  ;;  %v145_v34 = vpop.f32.mrf.mxu1 }
 0x1c1   :  { %v248_v35 = vadd.f32 %v247_v30, %v116_v33  ;;  %v259_v36 = vsub.f32 %v145_v34, %v218_v29 }
 0x1c3   :  { %476 = vst.msk [vmem:[#allocation2] sm:$0xff] %vm475_vm1, %v248_v35 }
 0x1c4   :  { %484 = vst.msk [vmem:[#allocation3] sm:$0xff] %vm475_vm1, %v259_v36 }
 0x1c7   :  { %v426_v55 = vpop.f32.mrf.mxu2  ;;  %v455_v56 = vpop.f32.mrf.mxu3 }
 0x1c8   :  { %v119_v39 = vpop.f32.mrf.mxu0  ;;  %v148_v40 = vpop.f32.mrf.mxu1 }
 0x1c9   :  { %v251_v41 = vadd.f32 %v250_v32, %v119_v39  ;;  %v260_v42 = vsub.f32 %v148_v40, %v221_v31 }
 0x1ca   :  { %v548_v43 = vld [vmem:[#allocation2] sm:$0xff] }
 0x1cb   :  { %477 = vst.msk [vmem:[#allocation2 + $0x8] sm:$0xff] %vm475_vm1, %v251_v41  ;;  %v565_v44 = vld [vmem:[#allocation3] sm:$0xff] }
 0x1cc   :  { %485 = vst.msk [vmem:[#allocation3 + $0x8] sm:$0xff] %vm475_vm1, %v260_v42 }
 0x1cd   :  { %557 = vst.msk [vmem:[#allocation7] sm:$0xff] %vm475_vm1, %v548_v43 }
 0x1ce   :  { %573 = vst.msk [vmem:[#allocation8] sm:$0xff] %vm475_vm1, %v565_v44 }
 0x1cf   :  { %v429_v2 = vpop.f32.mrf.mxu2  ;;  %v458_v3 = vpop.f32.mrf.mxu3 }
 0x1d0   :  { %v122_v47 = vpop.f32.mrf.mxu0  ;;  %v151_v48 = vpop.f32.mrf.mxu1 }
 0x1d1   :  { %v254_v49 = vadd.f32 %v253_v38, %v122_v47  ;;  %v261_v50 = vsub.f32 %v151_v48, %v224_v37 }
 0x1d2   :  { %v549_v51 = vld [vmem:[#allocation2 + $0x8] sm:$0xff] }
 0x1d3   :  { %478 = vst.msk [vmem:[#allocation2 + $0x10] sm:$0xff] %vm475_vm1, %v254_v49  ;;  %v566_v52 = vld [vmem:[#allocation3 + $0x8] sm:$0xff] }
 0x1d4   :  { %486 = vst.msk [vmem:[#allocation3 + $0x10] sm:$0xff] %vm475_vm1, %v261_v50 }
 0x1d5   :  { %558 = vst.msk [vmem:[#allocation7 + $0x8] sm:$0xff] %vm475_vm1, %v549_v51 }
 0x1d6   :  { %574 = vst.msk [vmem:[#allocation8 + $0x8] sm:$0xff] %vm475_vm1, %v566_v52 }
 0x1d7   :  { %v432_v11 = vpop.f32.mrf.mxu2  ;;  %v461_v12 = vpop.f32.mrf.mxu3 }
 0x1d8   :  { %v125_v53 = vpop.f32.mrf.mxu0  ;;  %v154_v54 = vpop.f32.mrf.mxu1 }
 0x1d9   :  { %v257_v57 = vadd.f32 %v256_v46, %v125_v53  ;;  %v262_v58 = vsub.f32 %v154_v54, %v227_v45 }
 0x1da   :  { %v550_v59 = vld [vmem:[#allocation2 + $0x10] sm:$0xff] }
 0x1db   :  { %479 = vst.msk [vmem:[#allocation2 + $0x18] sm:$0xff] %vm475_vm1, %v257_v57  ;;  %v567_v60 = vld [vmem:[#allocation3 + $0x10] sm:$0xff] }
 0x1dc   :  { %487 = vst.msk [vmem:[#allocation3 + $0x18] sm:$0xff] %vm475_vm1, %v262_v58 }
 0x1dd   :  { %559 = vst.msk [vmem:[#allocation7 + $0x10] sm:$0xff] %vm475_vm1, %v550_v59 }
 0x1de   :  { %575 = vst.msk [vmem:[#allocation8 + $0x10] sm:$0xff] %vm475_vm1, %v567_v60 }
 0x1df   :  { %v435_v19 = vpop.f32.mrf.mxu2  ;;  %v464_v20 = vpop.f32.mrf.mxu3 }
 0x1e0   :  { %v324_v61 = vpop.f32.mrf.mxu0  ;;  %v353_v62 = vpop.f32.mrf.mxu1 }
 0x1e1   :  { %v456_v63 = vadd.f32 %v455_v56, %v324_v61  ;;  %v467_v0 = vsub.f32 %v353_v62, %v426_v55 }
 0x1e2   :  { %v551_v1 = vld [vmem:[#allocation2 + $0x18] sm:$0xff] }
 0x1e3   :  { %480 = vst.msk [vmem:[#allocation2 + $0x20] sm:$0xff] %vm475_vm1, %v456_v63  ;;  %v568_v4 = vld [vmem:[#allocation3 + $0x18] sm:$0xff] }
 0x1e4   :  { %488 = vst.msk [vmem:[#allocation3 + $0x20] sm:$0xff] %vm475_vm1, %v467_v0 }
 0x1e5   :  { %560 = vst.msk [vmem:[#allocation7 + $0x18] sm:$0xff] %vm475_vm1, %v551_v1 }
 0x1e6   :  { %576 = vst.msk [vmem:[#allocation8 + $0x18] sm:$0xff] %vm475_vm1, %v568_v4 }
 0x1e8   :  { %v327_v5 = vpop.f32.mrf.mxu0  ;;  %v356_v6 = vpop.f32.mrf.mxu1 }
 0x1e9   :  { %v459_v7 = vadd.f32 %v458_v3, %v327_v5  ;;  %v468_v8 = vsub.f32 %v356_v6, %v429_v2 }
 0x1ea   :  { %v552_v9 = vld [vmem:[#allocation2 + $0x20] sm:$0xff] }
 0x1eb   :  { %481 = vst.msk [vmem:[#allocation2 + $0x28] sm:$0xff] %vm475_vm1, %v459_v7  ;;  %v569_v10 = vld [vmem:[#allocation3 + $0x20] sm:$0xff] }
 0x1ec   :  { %489 = vst.msk [vmem:[#allocation3 + $0x28] sm:$0xff] %vm475_vm1, %v468_v8 }
 0x1ed   :  { %561 = vst.msk [vmem:[#allocation7 + $0x20] sm:$0xff] %vm475_vm1, %v552_v9 }
 0x1ee   :  { %577 = vst.msk [vmem:[#allocation8 + $0x20] sm:$0xff] %vm475_vm1, %v569_v10 }
 0x1f0   :  { %v330_v13 = vpop.f32.mrf.mxu0  ;;  %v359_v14 = vpop.f32.mrf.mxu1 }
 0x1f1   :  { %v462_v15 = vadd.f32 %v461_v12, %v330_v13  ;;  %v469_v16 = vsub.f32 %v359_v14, %v432_v11 }
 0x1f2   :  { %v553_v17 = vld [vmem:[#allocation2 + $0x28] sm:$0xff] }
 0x1f3   :  { %482 = vst.msk [vmem:[#allocation2 + $0x30] sm:$0xff] %vm475_vm1, %v462_v15  ;;  %v570_v18 = vld [vmem:[#allocation3 + $0x28] sm:$0xff] }
 0x1f4   :  { %490 = vst.msk [vmem:[#allocation3 + $0x30] sm:$0xff] %vm475_vm1, %v469_v16 }
 0x1f5   :  { %562 = vst.msk [vmem:[#allocation7 + $0x28] sm:$0xff] %vm475_vm1, %v553_v17 }
 0x1f6   :  { %578 = vst.msk [vmem:[#allocation8 + $0x28] sm:$0xff] %vm475_vm1, %v570_v18 }
 0x1f8   :  { %v333_v21 = vpop.f32.mrf.mxu0  ;;  %v362_v22 = vpop.f32.mrf.mxu1 }
 0x1f9   :  { %v465_v23 = vadd.f32 %v464_v20, %v333_v21  ;;  %v470_v24 = vsub.f32 %v362_v22, %v435_v19 }
 0x1fa   :  { %v554_v25 = vld [vmem:[#allocation2 + $0x30] sm:$0xff] }
 0x1fb   :  { %483 = vst.msk [vmem:[#allocation2 + $0x38] sm:$0xff] %vm475_vm1, %v465_v23  ;;  %v571_v26 = vld [vmem:[#allocation3 + $0x30] sm:$0xff] }
 0x1fc   :  { %491 = vst.msk [vmem:[#allocation3 + $0x38] sm:$0xff] %vm475_vm1, %v470_v24 }
 0x1fd   :  { %563 = vst.msk [vmem:[#allocation7 + $0x30] sm:$0xff] %vm475_vm1, %v554_v25 }
 0x1fe   :  { %579 = vst.msk [vmem:[#allocation8 + $0x30] sm:$0xff] %vm475_vm1, %v571_v26 }
 0x202   :  { %v555_v27 = vld [vmem:[#allocation2 + $0x38] sm:$0xff] }
 0x203   :  { %564 = vst.msk [vmem:[#allocation7 + $0x38] sm:$0xff] %vm475_vm1, %v555_v27  ;;  %v572_v28 = vld [vmem:[#allocation3 + $0x38] sm:$0xff] }
 0x204   :  { %593 = dma.vmem_to_hbm [thread:$0]  %s586_s2, 1024, %s588_s5, [#allocation6], %s737_s20, %s737_s20, %s738_s21   ;;  %580 = vst.msk [vmem:[#allocation8 + $0x38] sm:$0xff] %vm475_vm1, %v572_v28 }
 0x205   :  { %606 = dma.vmem_to_hbm [thread:$0]  %s599_s7, 1024, %s601_s10, [#allocation9], %s737_s20, %s737_s20, %s738_s21  }
 0x206   :  { %732 = dma.done.wait [#allocation6], 1024  }
 0x207   :  { %733 = vsyncadd [#allocation6], 4294966272 }
 0x208   :  { %734 = dma.done.wait [#allocation9], 1024  }
 0x209   :  { %735 = vsyncadd [#allocation9], 4294966272 }
 0x20a   :  { %615 = vsyncpa [#allocation5], 1 }
 0x20b   :  { %616 = vsyncpa [#allocation6], 1 }
 0x20c   :  { %617 = vsyncpa [#allocation9], 1 }

</bundles_post_ra>
